<compile_context>
chip_gen: v5e
topology: v5e:2x2
jax: 0.10.0
libtpu: 0.0.40
codegen_flags: <defaults>
</compile_context>

<pallas_src>
import functools

import jax
import jax.numpy as jnp
from jax.experimental import pallas as pl
from jax.experimental.pallas import tpu as pltpu


def _hsic_group_kernel(gamma_ref, x_ref, y_ref, o_ref, *, group, gram_dtype):
    # gamma_ref: SMEM (1,) f32 scalar-prefetch operand holding 1/(2*sigma^2)
    # x_ref: VMEM (G, n, dx) block, y_ref: VMEM (G, n, dy) block
    # o_ref: VMEM (1, 1, G) block (G HSIC scalars, lane-dense row)
    gamma = gamma_ref[0]
    n = x_ref.shape[1]
    inv_n = 1.0 / n
    scale = 1.0 / float((n - 1) ** 2)

    def rbf(A):
        # Gram = A @ A.T on the MXU as a last-with-last contraction (no
        # explicit transpose materialized).  f32 accumulation always.
        Ag = A.astype(gram_dtype)
        gram = jax.lax.dot_general(
            Ag, Ag, (((1,), (1,)), ((), ())),
            preferred_element_type=jnp.float32)              # (n, n)
        sq = jnp.sum(A * A, axis=-1, keepdims=True)          # (n, 1), f32
        sq_row = jnp.reshape(sq, (1, n))                     # tiny relayout
        # ||a_i - a_j||^2 ; clamp tiny negatives from cancellation.
        d2 = jnp.maximum(sq + sq_row - 2.0 * gram, 0.0)
        return jnp.exp(-d2 * gamma)                          # EUP

    # TODO(synk): on v6e/v7x the exp and K*L product could run in bf16
    # (packed vregs) for another ~1.5-2x on the elementwise phase; kept f32
    # here to match the PyTorch reference tolerance (and v5e has no bf16 VPU).
    vals = []
    for g in range(group):                                   # static unroll
        K = rbf(x_ref[g])                                    # (n, n)
        L = rbf(y_ref[g])                                    # (n, n)
        rK = jnp.sum(K, axis=1, keepdims=True)               # (n, 1)
        rL = jnp.sum(L, axis=1, keepdims=True)               # (n, 1)
        sK = jnp.sum(rK)                                     # scalar
        sL = jnp.sum(rL)
        # trace(Kc @ Lc) without materializing Lc (K, L symmetric, H idemp.):
        tr = (jnp.sum(K * L)
              - (2.0 * inv_n) * jnp.sum(rK * rL)
              + (inv_n * inv_n) * sK * sL)
        vals.append(tr * scale)

    # Assemble the G scalars into one lane-dense row and store once.
    lane = jax.lax.broadcasted_iota(jnp.int32, (1, 1, group), 2)
    row = jnp.zeros((1, 1, group), jnp.float32)
    for g, v in enumerate(vals):
        row = jnp.where(lane == g, v, row)
    o_ref[...] = row


def _physical_vmem_bytes():
    try:
        info = pltpu.get_tpu_info()
        cap = getattr(info, "vmem_capacity_bytes", None)
        if cap:
            return int(cap)
    except Exception:
        pass
    return 64 << 20  # conservative fallback (v7x-sized)


def _vmem_limit_bytes(n, dx, dy, group):
    pad8 = lambda v: -(-v // 8) * 8
    pad128 = lambda v: -(-v // 128) * 128
    n8, n128 = pad8(n), pad128(n)
    # double-buffered grouped X/Y input blocks
    inputs = 2 * 4 * group * n8 * (pad128(dx) + pad128(dy))
    # K, L, d2/gram temp, K*L temp + slack (f32)
    mats = 5 * 4 * n8 * n128
    est = inputs + mats + (2 << 20)
    # Generation-aware cap: ~7/8 of physical VMEM leaves headroom for the
    # compiler's internal scratch (112 MiB on v5e/v6e, 56 MiB on v7x).
    cap = (_physical_vmem_bytes() * 7) // 8
    return int(min(max(est, 32 << 20), cap))


def _pick_group(B, n):
    if B <= 1:
        return 1
    # Keep >= 2 grid steps (megacore on v7x), cap per-step input block size.
    g = min(8, max(1, B // 2))
    if n >= 1024:
        g = min(g, 2)
    return max(1, g)


def hsic_pallas_batched(X, Y, sigma=1.0, gram_dtype=jnp.float32, group_size=None):
    """Batched HSIC: X (B, n, dx), Y (B, n, dy) -> (B,) float32.

    G pairs are processed per grid step with a lane-dense (1, 1, G) output
    row; the grid axis is 'parallel'.  Set gram_dtype=jnp.bfloat16 when the
    feature dim is large (>~64) to cut MXU passes ~3x and halve Gram operand
    traffic (f32 accumulation kept; expect ~3-digit agreement instead of ~6).
    """
    X = jnp.asarray(X, jnp.float32)
    Y = jnp.asarray(Y, jnp.float32)
    B, n, dx = X.shape
    By, ny, dy = Y.shape
    if B != By or n != ny:
        raise ValueError("X and Y must share batch and sample counts")
    if n < 2:
        raise ValueError("HSIC requires n >= 2 samples ((n-1)^2 denominator)")
    if sigma == 0.0:
        raise ValueError("sigma must be non-zero")

    G = _pick_group(B, n) if group_size is None else int(group_size)
    num_steps = -(-B // G)
    Bp = num_steps * G
    if Bp != B:  # pad with zero pairs (their HSIC is exactly 0, discarded anyway)
        X = jnp.concatenate([X, jnp.zeros((Bp - B, n, dx), jnp.float32)], axis=0)
        Y = jnp.concatenate([Y, jnp.zeros((Bp - B, n, dy), jnp.float32)], axis=0)

    # 1/(2 sigma^2) staged into SMEM once, before the grid (scalar prefetch).
    gamma = jnp.reshape(jnp.asarray(1.0 / (2.0 * sigma ** 2), jnp.float32), (1,))

    kernel = functools.partial(_hsic_group_kernel, group=G, gram_dtype=gram_dtype)
    out = pl.pallas_call(
        kernel,
        out_shape=jax.ShapeDtypeStruct((num_steps, 1, G), jnp.float32),
        grid_spec=pltpu.PrefetchScalarGridSpec(
            num_scalar_prefetch=1,
            grid=(num_steps,),
            in_specs=[
                pl.BlockSpec((G, n, dx), lambda b, gamma: (b, 0, 0)),  # X group
                pl.BlockSpec((G, n, dy), lambda b, gamma: (b, 0, 0)),  # Y group
            ],
            out_specs=pl.BlockSpec((1, 1, G), lambda b, gamma: (b, 0, 0)),
        ),
        compiler_params=pltpu.CompilerParams(
            dimension_semantics=("parallel",),
            vmem_limit_bytes=_vmem_limit_bytes(n, dx, dy, G),
        ),
    )(gamma, X, Y)
    return jnp.reshape(out, (Bp,))[:B]


def hsic_pallas(X, Y, sigma=1.0, gram_dtype=jnp.float32):
    """Single-pair HSIC(X, Y), X: (n, dx), Y: (n, dy). Returns scalar f32."""
    return hsic_pallas_batched(X[None], Y[None], sigma=sigma,
                               gram_dtype=gram_dtype)[0]


def hsic_reference(X, Y, sigma=1.0):
    """Pure-JAX reference mirroring the PyTorch module exactly."""
    def rbf(A):
        d = jnp.sqrt(jnp.maximum(
            jnp.sum((A[:, None, :] - A[None, :, :]) ** 2, axis=-1), 0.0))
        return jnp.exp(-(d ** 2) / (2.0 * sigma ** 2))

    n = X.shape[0]
    K = rbf(X)
    L = rbf(Y)
    H = jnp.eye(n) - jnp.ones((n, n)) / n
    Kc = H @ K @ H
    Lc = H @ L @ H
    return jnp.trace(Kc @ Lc) / (n - 1) ** 2


if __name__ == "__main__":
    key = jax.random.PRNGKey(0)
    kx, ky = jax.random.split(key)

    # Small shapes consistent with the module: B pairs of (n samples, d feats).
    B, n, dx, dy = 4, 8, 32, 32
    X = jax.random.normal(kx, (B, n, dx), dtype=jnp.float32)
    Y = jax.random.normal(ky, (B, n, dy), dtype=jnp.float32)
    sigma = 1.0

    out = hsic_pallas_batched(X, Y, sigma=sigma)
    out = jax.block_until_ready(out)
    assert out.shape == (B,)

    refs = jnp.stack([hsic_reference(X[b], Y[b], sigma) for b in range(B)])
    assert jnp.allclose(out, refs, rtol=1e-4, atol=1e-5), (out, refs)

    single = jax.block_until_ready(hsic_pallas(X[0], Y[0], sigma=sigma))
    assert jnp.allclose(single, refs[0], rtol=1e-4, atol=1e-5), (single, refs[0])

    # Odd batch size exercises the padding + grouping path.
    out3 = jax.block_until_ready(hsic_pallas_batched(X[:3], Y[:3], sigma=sigma))
    assert jnp.allclose(out3, refs[:3], rtol=1e-4, atol=1e-5), (out3, refs[:3])

    print("KERNEL_OK")
</pallas_src>

<mosaic_0001>
module attributes {stable_mosaic.version = 11 : i64} {
  func.func @_hsic_group_kernel(%arg0: i32, %arg1: memref<1xf32, #tpu.memory_space<smem>>, %arg2: memref<2x8x32xf32, #tpu.memory_space<vmem>>, %arg3: memref<2x8x32xf32, #tpu.memory_space<vmem>>, %arg4: memref<1x1x2xf32, #tpu.memory_space<vmem>>) attributes {dimension_semantics = [#tpu.dimension_semantics<parallel>], iteration_bounds = array<i64: 2>, scalar_prefetch = 1 : i64, scratch_operands = 0 : i64, tpu.core_type = #tpu.core_type<tc>, window_params = [{transform_indices = @transform_0, window_bounds = array<i64: 2, 8, 32>}, {transform_indices = @transform_1, window_bounds = array<i64: 2, 8, 32>}, {transform_indices = @transform_2, window_bounds = array<i64: 1, 1, 2>}]} {
    %c0 = arith.constant 0 : index
    %0 = memref.load %arg1[%c0] : memref<1xf32, #tpu.memory_space<smem>>
    %c0_0 = arith.constant 0 : index
    %c0_1 = arith.constant 0 : index
    %c0_2 = arith.constant 0 : index
    %1 = vector.load %arg2[%c0_0, %c0_1, %c0_2] : memref<2x8x32xf32, #tpu.memory_space<vmem>>, vector<1x8x32xf32>
    %2 = vector.shape_cast %1 : vector<1x8x32xf32> to vector<8x32xf32>
    %cst = arith.constant dense<0.000000e+00> : vector<8x8xf32>
    %3 = tpu.matmul %2, %2, %cst {dimension_numbers = #tpu.dot_dimension_numbers<[1], [1], [0], [0], [0, 0, 1, 0], [], []>} : vector<8x32xf32>, vector<8x32xf32>, vector<8x8xf32> -> vector<8x8xf32>
    %4 = arith.mulf %2, %2 : vector<8x32xf32>
    %cst_3 = arith.constant dense<0.000000e+00> : vector<8xf32>
    %5 = vector.multi_reduction <add>, %4, %cst_3 [1] : vector<8x32xf32> to vector<8xf32>
    %6 = vector.shape_cast %5 : vector<8xf32> to vector<8x1xf32>
    %7 = vector.shape_cast %6 : vector<8x1xf32> to vector<1x8xf32>
    %8 = vector.broadcast %6 : vector<8x1xf32> to vector<8x8xf32>
    %9 = vector.broadcast %7 : vector<1x8xf32> to vector<8x8xf32>
    %10 = arith.addf %8, %9 : vector<8x8xf32>
    %cst_4 = arith.constant 2.000000e+00 : f32
    %11 = vector.broadcast %cst_4 : f32 to vector<8x8xf32>
    %12 = arith.mulf %11, %3 : vector<8x8xf32>
    %13 = arith.subf %10, %12 : vector<8x8xf32>
    %cst_5 = arith.constant 0.000000e+00 : f32
    %14 = vector.broadcast %cst_5 : f32 to vector<8x8xf32>
    %15 = arith.maximumf %13, %14 : vector<8x8xf32>
    %cst_6 = arith.constant 0.000000e+00 : f32
    %16 = vector.broadcast %cst_6 : f32 to vector<8x8xf32>
    %17 = arith.subf %16, %15 : vector<8x8xf32>
    %18 = vector.broadcast %0 : f32 to vector<8x8xf32>
    %19 = arith.mulf %17, %18 : vector<8x8xf32>
    %20 = math.exp %19 : vector<8x8xf32>
    %c0_7 = arith.constant 0 : index
    %c0_8 = arith.constant 0 : index
    %c0_9 = arith.constant 0 : index
    %21 = vector.load %arg3[%c0_7, %c0_8, %c0_9] : memref<2x8x32xf32, #tpu.memory_space<vmem>>, vector<1x8x32xf32>
    %22 = vector.shape_cast %21 : vector<1x8x32xf32> to vector<8x32xf32>
    %cst_10 = arith.constant dense<0.000000e+00> : vector<8x8xf32>
    %23 = tpu.matmul %22, %22, %cst_10 {dimension_numbers = #tpu.dot_dimension_numbers<[1], [1], [0], [0], [0, 0, 1, 0], [], []>} : vector<8x32xf32>, vector<8x32xf32>, vector<8x8xf32> -> vector<8x8xf32>
    %24 = arith.mulf %22, %22 : vector<8x32xf32>
    %cst_11 = arith.constant dense<0.000000e+00> : vector<8xf32>
    %25 = vector.multi_reduction <add>, %24, %cst_11 [1] : vector<8x32xf32> to vector<8xf32>
    %26 = vector.shape_cast %25 : vector<8xf32> to vector<8x1xf32>
    %27 = vector.shape_cast %26 : vector<8x1xf32> to vector<1x8xf32>
    %28 = vector.broadcast %26 : vector<8x1xf32> to vector<8x8xf32>
    %29 = vector.broadcast %27 : vector<1x8xf32> to vector<8x8xf32>
    %30 = arith.addf %28, %29 : vector<8x8xf32>
    %cst_12 = arith.constant 2.000000e+00 : f32
    %31 = vector.broadcast %cst_12 : f32 to vector<8x8xf32>
    %32 = arith.mulf %31, %23 : vector<8x8xf32>
    %33 = arith.subf %30, %32 : vector<8x8xf32>
    %cst_13 = arith.constant 0.000000e+00 : f32
    %34 = vector.broadcast %cst_13 : f32 to vector<8x8xf32>
    %35 = arith.maximumf %33, %34 : vector<8x8xf32>
    %cst_14 = arith.constant 0.000000e+00 : f32
    %36 = vector.broadcast %cst_14 : f32 to vector<8x8xf32>
    %37 = arith.subf %36, %35 : vector<8x8xf32>
    %38 = vector.broadcast %0 : f32 to vector<8x8xf32>
    %39 = arith.mulf %37, %38 : vector<8x8xf32>
    %40 = math.exp %39 : vector<8x8xf32>
    %cst_15 = arith.constant dense<0.000000e+00> : vector<8xf32>
    %41 = vector.multi_reduction <add>, %20, %cst_15 [1] : vector<8x8xf32> to vector<8xf32>
    %42 = vector.shape_cast %41 : vector<8xf32> to vector<8x1xf32>
    %cst_16 = arith.constant dense<0.000000e+00> : vector<8xf32>
    %43 = vector.multi_reduction <add>, %40, %cst_16 [1] : vector<8x8xf32> to vector<8xf32>
    %44 = vector.shape_cast %43 : vector<8xf32> to vector<8x1xf32>
    %45 = vector.shape_cast %42 : vector<8x1xf32> to vector<1x8x1xf32>
    %cst_17 = arith.constant dense<0.000000e+00> : vector<1xf32>
    %46 = vector.multi_reduction <add>, %45, %cst_17 [1, 2] : vector<1x8x1xf32> to vector<1xf32>
    %47 = vector.shape_cast %46 : vector<1xf32> to vector<1x1x1xf32>
    %48 = vector.extract %47[0, 0, 0] : f32 from vector<1x1x1xf32>
    %49 = vector.shape_cast %44 : vector<8x1xf32> to vector<1x8x1xf32>
    %cst_18 = arith.constant dense<0.000000e+00> : vector<1xf32>
    %50 = vector.multi_reduction <add>, %49, %cst_18 [1, 2] : vector<1x8x1xf32> to vector<1xf32>
    %51 = vector.shape_cast %50 : vector<1xf32> to vector<1x1x1xf32>
    %52 = vector.extract %51[0, 0, 0] : f32 from vector<1x1x1xf32>
    %53 = arith.mulf %20, %40 : vector<8x8xf32>
    %54 = vector.shape_cast %53 : vector<8x8xf32> to vector<1x8x8xf32>
    %cst_19 = arith.constant dense<0.000000e+00> : vector<1xf32>
    %55 = vector.multi_reduction <add>, %54, %cst_19 [1, 2] : vector<1x8x8xf32> to vector<1xf32>
    %56 = vector.shape_cast %55 : vector<1xf32> to vector<1x1x1xf32>
    %57 = vector.extract %56[0, 0, 0] : f32 from vector<1x1x1xf32>
    %58 = arith.mulf %42, %44 : vector<8x1xf32>
    %59 = vector.shape_cast %58 : vector<8x1xf32> to vector<1x8x1xf32>
    %cst_20 = arith.constant dense<0.000000e+00> : vector<1xf32>
    %60 = vector.multi_reduction <add>, %59, %cst_20 [1, 2] : vector<1x8x1xf32> to vector<1xf32>
    %61 = vector.shape_cast %60 : vector<1xf32> to vector<1x1x1xf32>
    %62 = vector.extract %61[0, 0, 0] : f32 from vector<1x1x1xf32>
    %cst_21 = arith.constant 2.500000e-01 : f32
    %63 = arith.mulf %cst_21, %62 : f32
    %64 = arith.subf %57, %63 : f32
    %cst_22 = arith.constant 1.562500e-02 : f32
    %65 = arith.mulf %cst_22, %48 : f32
    %66 = arith.mulf %65, %52 : f32
    %67 = arith.addf %64, %66 : f32
    %cst_23 = arith.constant 0.0204081628 : f32
    %68 = arith.mulf %67, %cst_23 : f32
    %c1 = arith.constant 1 : index
    %c0_24 = arith.constant 0 : index
    %c0_25 = arith.constant 0 : index
    %69 = vector.load %arg2[%c1, %c0_24, %c0_25] : memref<2x8x32xf32, #tpu.memory_space<vmem>>, vector<1x8x32xf32>
    %70 = vector.shape_cast %69 : vector<1x8x32xf32> to vector<8x32xf32>
    %cst_26 = arith.constant dense<0.000000e+00> : vector<8x8xf32>
    %71 = tpu.matmul %70, %70, %cst_26 {dimension_numbers = #tpu.dot_dimension_numbers<[1], [1], [0], [0], [0, 0, 1, 0], [], []>} : vector<8x32xf32>, vector<8x32xf32>, vector<8x8xf32> -> vector<8x8xf32>
    %72 = arith.mulf %70, %70 : vector<8x32xf32>
    %cst_27 = arith.constant dense<0.000000e+00> : vector<8xf32>
    %73 = vector.multi_reduction <add>, %72, %cst_27 [1] : vector<8x32xf32> to vector<8xf32>
    %74 = vector.shape_cast %73 : vector<8xf32> to vector<8x1xf32>
    %75 = vector.shape_cast %74 : vector<8x1xf32> to vector<1x8xf32>
    %76 = vector.broadcast %74 : vector<8x1xf32> to vector<8x8xf32>
    %77 = vector.broadcast %75 : vector<1x8xf32> to vector<8x8xf32>
    %78 = arith.addf %76, %77 : vector<8x8xf32>
    %cst_28 = arith.constant 2.000000e+00 : f32
    %79 = vector.broadcast %cst_28 : f32 to vector<8x8xf32>
    %80 = arith.mulf %79, %71 : vector<8x8xf32>
    %81 = arith.subf %78, %80 : vector<8x8xf32>
    %cst_29 = arith.constant 0.000000e+00 : f32
    %82 = vector.broadcast %cst_29 : f32 to vector<8x8xf32>
    %83 = arith.maximumf %81, %82 : vector<8x8xf32>
    %cst_30 = arith.constant 0.000000e+00 : f32
    %84 = vector.broadcast %cst_30 : f32 to vector<8x8xf32>
    %85 = arith.subf %84, %83 : vector<8x8xf32>
    %86 = vector.broadcast %0 : f32 to vector<8x8xf32>
    %87 = arith.mulf %85, %86 : vector<8x8xf32>
    %88 = math.exp %87 : vector<8x8xf32>
    %c1_31 = arith.constant 1 : index
    %c0_32 = arith.constant 0 : index
    %c0_33 = arith.constant 0 : index
    %89 = vector.load %arg3[%c1_31, %c0_32, %c0_33] : memref<2x8x32xf32, #tpu.memory_space<vmem>>, vector<1x8x32xf32>
    %90 = vector.shape_cast %89 : vector<1x8x32xf32> to vector<8x32xf32>
    %cst_34 = arith.constant dense<0.000000e+00> : vector<8x8xf32>
    %91 = tpu.matmul %90, %90, %cst_34 {dimension_numbers = #tpu.dot_dimension_numbers<[1], [1], [0], [0], [0, 0, 1, 0], [], []>} : vector<8x32xf32>, vector<8x32xf32>, vector<8x8xf32> -> vector<8x8xf32>
    %92 = arith.mulf %90, %90 : vector<8x32xf32>
    %cst_35 = arith.constant dense<0.000000e+00> : vector<8xf32>
    %93 = vector.multi_reduction <add>, %92, %cst_35 [1] : vector<8x32xf32> to vector<8xf32>
    %94 = vector.shape_cast %93 : vector<8xf32> to vector<8x1xf32>
    %95 = vector.shape_cast %94 : vector<8x1xf32> to vector<1x8xf32>
    %96 = vector.broadcast %94 : vector<8x1xf32> to vector<8x8xf32>
    %97 = vector.broadcast %95 : vector<1x8xf32> to vector<8x8xf32>
    %98 = arith.addf %96, %97 : vector<8x8xf32>
    %cst_36 = arith.constant 2.000000e+00 : f32
    %99 = vector.broadcast %cst_36 : f32 to vector<8x8xf32>
    %100 = arith.mulf %99, %91 : vector<8x8xf32>
    %101 = arith.subf %98, %100 : vector<8x8xf32>
    %cst_37 = arith.constant 0.000000e+00 : f32
    %102 = vector.broadcast %cst_37 : f32 to vector<8x8xf32>
    %103 = arith.maximumf %101, %102 : vector<8x8xf32>
    %cst_38 = arith.constant 0.000000e+00 : f32
    %104 = vector.broadcast %cst_38 : f32 to vector<8x8xf32>
    %105 = arith.subf %104, %103 : vector<8x8xf32>
    %106 = vector.broadcast %0 : f32 to vector<8x8xf32>
    %107 = arith.mulf %105, %106 : vector<8x8xf32>
    %108 = math.exp %107 : vector<8x8xf32>
    %cst_39 = arith.constant dense<0.000000e+00> : vector<8xf32>
    %109 = vector.multi_reduction <add>, %88, %cst_39 [1] : vector<8x8xf32> to vector<8xf32>
    %110 = vector.shape_cast %109 : vector<8xf32> to vector<8x1xf32>
    %cst_40 = arith.constant dense<0.000000e+00> : vector<8xf32>
    %111 = vector.multi_reduction <add>, %108, %cst_40 [1] : vector<8x8xf32> to vector<8xf32>
    %112 = vector.shape_cast %111 : vector<8xf32> to vector<8x1xf32>
    %113 = vector.shape_cast %110 : vector<8x1xf32> to vector<1x8x1xf32>
    %cst_41 = arith.constant dense<0.000000e+00> : vector<1xf32>
    %114 = vector.multi_reduction <add>, %113, %cst_41 [1, 2] : vector<1x8x1xf32> to vector<1xf32>
    %115 = vector.shape_cast %114 : vector<1xf32> to vector<1x1x1xf32>
    %116 = vector.extract %115[0, 0, 0] : f32 from vector<1x1x1xf32>
    %117 = vector.shape_cast %112 : vector<8x1xf32> to vector<1x8x1xf32>
    %cst_42 = arith.constant dense<0.000000e+00> : vector<1xf32>
    %118 = vector.multi_reduction <add>, %117, %cst_42 [1, 2] : vector<1x8x1xf32> to vector<1xf32>
    %119 = vector.shape_cast %118 : vector<1xf32> to vector<1x1x1xf32>
    %120 = vector.extract %119[0, 0, 0] : f32 from vector<1x1x1xf32>
    %121 = arith.mulf %88, %108 : vector<8x8xf32>
    %122 = vector.shape_cast %121 : vector<8x8xf32> to vector<1x8x8xf32>
    %cst_43 = arith.constant dense<0.000000e+00> : vector<1xf32>
    %123 = vector.multi_reduction <add>, %122, %cst_43 [1, 2] : vector<1x8x8xf32> to vector<1xf32>
    %124 = vector.shape_cast %123 : vector<1xf32> to vector<1x1x1xf32>
    %125 = vector.extract %124[0, 0, 0] : f32 from vector<1x1x1xf32>
    %126 = arith.mulf %110, %112 : vector<8x1xf32>
    %127 = vector.shape_cast %126 : vector<8x1xf32> to vector<1x8x1xf32>
    %cst_44 = arith.constant dense<0.000000e+00> : vector<1xf32>
    %128 = vector.multi_reduction <add>, %127, %cst_44 [1, 2] : vector<1x8x1xf32> to vector<1xf32>
    %129 = vector.shape_cast %128 : vector<1xf32> to vector<1x1x1xf32>
    %130 = vector.extract %129[0, 0, 0] : f32 from vector<1x1x1xf32>
    %cst_45 = arith.constant 2.500000e-01 : f32
    %131 = arith.mulf %cst_45, %130 : f32
    %132 = arith.subf %125, %131 : f32
    %cst_46 = arith.constant 1.562500e-02 : f32
    %133 = arith.mulf %cst_46, %116 : f32
    %134 = arith.mulf %133, %120 : f32
    %135 = arith.addf %132, %134 : f32
    %cst_47 = arith.constant 0.0204081628 : f32
    %136 = arith.mulf %135, %cst_47 : f32
    %137 = tpu.iota {dimensions = array<i32: 2>} : vector<1x1x2xi32>
    %cst_48 = arith.constant 0.000000e+00 : f32
    %138 = vector.broadcast %cst_48 : f32 to vector<1x1x2xf32>
    %c0_i32 = arith.constant 0 : i32
    %139 = vector.broadcast %c0_i32 : i32 to vector<1x1x2xi32>
    %140 = arith.cmpi eq, %137, %139 : vector<1x1x2xi32>
    %141 = vector.broadcast %68 : f32 to vector<1x1x2xf32>
    %142 = arith.select %140, %141, %138 : vector<1x1x2xi1>, vector<1x1x2xf32>
    %c1_i32 = arith.constant 1 : i32
    %143 = vector.broadcast %c1_i32 : i32 to vector<1x1x2xi32>
    %144 = arith.cmpi eq, %137, %143 : vector<1x1x2xi32>
    %145 = vector.broadcast %136 : f32 to vector<1x1x2xf32>
    %146 = arith.select %144, %145, %142 : vector<1x1x2xi1>, vector<1x1x2xf32>
    %c0_49 = arith.constant 0 : index
    %c0_50 = arith.constant 0 : index
    %c0_51 = arith.constant 0 : index
    %147 = vector.load %arg4[%c0_49, %c0_50, %c0_51] : memref<1x1x2xf32, #tpu.memory_space<vmem>>, vector<1x1x2xf32>
    tpu.vector_store %arg4[%c0_49, %c0_50, %c0_51], %146 {strides = array<i32>} : memref<1x1x2xf32, #tpu.memory_space<vmem>>, vector<1x1x2xf32>,
    return
  }
  func.func @transform_0(%arg0: i32, %arg1: memref<1xf32, #tpu.memory_space<smem>>) -> (i32, i32, i32) {
    %c0_i32 = arith.constant 0 : i32
    %c0_i32_0 = arith.constant 0 : i32
    %c0_i32_1 = arith.constant 0 : i32
    return %arg0, %c0_i32, %c0_i32_0 : i32, i32, i32
  }
  func.func @transform_1(%arg0: i32, %arg1: memref<1xf32, #tpu.memory_space<smem>>) -> (i32, i32, i32) {
    %c0_i32 = arith.constant 0 : i32
    %c0_i32_0 = arith.constant 0 : i32
    %c0_i32_1 = arith.constant 0 : i32
    return %arg0, %c0_i32, %c0_i32_0 : i32, i32, i32
  }
  func.func @transform_2(%arg0: i32, %arg1: memref<1xf32, #tpu.memory_space<smem>>) -> (i32, i32, i32) {
    %c0_i32 = arith.constant 0 : i32
    %c0_i32_0 = arith.constant 0 : i32
    %c0_i32_1 = arith.constant 0 : i32
    return %arg0, %c0_i32, %c0_i32_0 : i32, i32, i32
  }
}

</mosaic_0001>

<bundles_post_ra>
// kernel: tpu_custom_call.1
= control target key start
LH: loop header
LB: loop body
LE: loop exit
PB: predicated region body
PF: predicated region fallthrough
CT: control target
= control target key end

     0   :  { %s1083_s0 = inlined_call_operand.<no memory space> [shape: f32[1], index: 0, kind: input, shape index: {}]   ;;  %s1084_s1 = inlined_call_operand.hbm [shape: f32[4,8,32], index: 1, kind: input, shape index: {}]   ;;  %s1085_s2 = inlined_call_operand.hbm [shape: f32[4,8,32], index: 2, kind: input, shape index: {}]   ;;  %s1086_s3 = inlined_call_operand.hbm [shape: f32[2,1,2], index: 3, kind: output, shape index: {}]  }
   0x1   :  { %1087 = sst [smem:[#allocation14_spill]] %s1084_s1 }
   0x2   :  { %1088 = sst [smem:[#allocation15_spill]] %s1085_s2 }
   0x3   :  { %8 = sst [smem:[#allocation3]] %s1083_s0 }
   0x4   :  { %9 = vsyncpa [#allocation5], 0 }
   0x5   :  { %11 = vsyncpa [#allocation5 + $0x1], 0 }
   0x6   :  { %12 = vsyncpa [#allocation8], 0 }
   0x7   :  { %14 = vsyncpa [#allocation8 + $0x1], 0 }
   0x8   :  { %15 = vsyncpa [#allocation6], 0 }
   0x9   :  { %17 = vsyncpa [#allocation6 + $0x1], 0  ;;  %s882_s14 = smov 0   ;;  %s884_s15 = smov 0  }
   0xa   :  { %s886_s16 = smov 0   ;;  %s888_s17 = smov 0  }
   0xb LB: > { %s903_s0 = sadd.s32 4294967295, %s855_s17   ;;  %s622_s18 = sadd.s32 4294967294, %s855_s17   ;;  %s855_s17 = sphi %s888_s17, %s1103_s17   ;;  %s851_s16 = sphi %s886_s16, %s1102_s16   ;;  %s847_s15 = sphi %s884_s15, %s1101_s15   ;;  %s843_s14 = sphi %s882_s14, %s1100_s14  }
   0xc   : > { %s907_s19 = sadd.s32 1, %s855_s17   ;;  %s30_s20 = sadd.s32 1, %s851_s16 }
   0xd   : > { %s27_s21 = ssub.s32 %s855_s17, %s907_s19  ;;  %p37_p0 = scmp.ne.s32.totalorder %s851_s16, %s847_s15 }
   0xe   : > { %p28_p1 = scmp.eq.s32.totalorder %s27_s21, 0  ;;  %p38_p2 = scmp.eq.s32.totalorder %s855_s17, 0 }
   0xf   : > { %p43_p3 = scmp.ne.s32.totalorder %s847_s15, %s843_s14  ;;  %p44_p4 = scmp.eq.s32.totalorder %s903_s0, 0 }
  0x10   : > { %s919_s22 = scalar_select %p28_p1, %s851_s16, %s30_s20  }
  0x11   : > { %p921_p5 = por %p38_p2, %p37_p0  ;;  %p925_p6 = por %p44_p4, %p43_p3 }
  0x12   : > { %1089 = sst [smem:[#allocation13_spill]] %s919_s22  ;;  %p93_p7 = scmp.eq.s32.totalorder %s903_s0, 1 }
  0x13   : > { %p99_p8 = scmp.eq.s32.totalorder %s622_s18, 1  ;;  %p681_p10 = scmp.lt.s32.totalorder %s855_s17, 2 }
  0x14   : > { %p932_p11 = por %p93_p7, %p37_p0  ;;  %s941_s27 = sand.u32 1, %s851_s16  }
  0x15   : > { %p936_p12 = por %p99_p8, %p43_p3  ;;  %s646_s28 = sshll.u32 %s855_s17, 4 }
  0x16   : > { %s625_s29 = sshll.u32 %s941_s27, 4  ;;  %s1094_s1 = sld [smem:[#allocation14_spill]] }
  0x17   : > { %s123_s7 = scalar_lea.vmem [#allocation4], %s625_s29  ;;  %p954_p13 = pnand %p681_p10, %p921_p5 }
  0x18   : > { %s131_s8 = sshll.u32 %s123_s7, 4  ;;  %p631_p0 = scmp.ge.s32.totalorder %s855_s17, 1  ;;  %s132_s8 = int_to_ptr.vmem [resolvable:$true] %s131_s8 }
  0x19   : > { %p161_p1 = scmp.lt.s32.totalorder %s855_s17, 3  ;;  %s120_s10 = scalar_lea.sflag [#allocation5], %s941_s27 }
  0x1a   : > { %p729_p3 = pneg %p954_p13 }
  0x1c   : > { %s128_s5 = scalar_lea.hbm %s1094_s1, %s646_s28  ;;  %s732_s20 = scalar_lea.hbm %s1094_s1, 32 }
  0x1d   : > { %s129_s6 = sshll.u32 %s128_s5, 4  ;;  %s130_s6 = int_to_ptr.hbm [resolvable:$true] %s129_s6 }
  0x1e   : > { %s725_s11 = sshra.s32 %s130_s6, 4  ;;  %s726_s11 = int_to_ptr.hbm [resolvable:$true] %s725_s11 }
  0x1f   : > { %s727_s12 = scalar_lea.hbm %s726_s11, 16  ;;  %p733_p5 = scmp.lt.s32.totalorder %s726_s11, %s1094_s1 }
  0x20   : > { %p728_p2 = scmp.ne.s32.totalorder %s726_s11, %s727_s12  ;;  %p734_p8 = scmp.lt.s32.totalorder %s732_s20, %s727_s12 }
  0x22   : > { %p730_p4 = pnand %p729_p3, %p728_p2  ;;  %p735_p10 = por %p734_p8, %p733_p5 }
  0x24   : > { %p731_p7 = pneg %p730_p4 }
  0x26   : > { %p736_p9 = pnand %p735_p10, %p731_p7 }
  0x28   : > { %739 = shalt.err (!%p736_p9)
}
  0x29   : > { %s857_s30 = smov 128   ;;  %s858_s4 = smov 8  }
  0x2a   : > { %673 = dma.hbm_to_vmem [thread:$0]  (!%p954_p13), %s130_s6, 256, %s132_s8, %s120_s10, %s857_s30, %s857_s30, %s858_s4  }
  0x2b   : > { %p978_p2 = pnand %p631_p0, %p161_p1  ;;  %s1097_s2 = sld [smem:[#allocation15_spill]] }
  0x2c   : > { %s145_s18 = scalar_lea.vmem [#allocation7], %s625_s29  ;;  %s142_s21 = scalar_lea.sflag [#allocation8], %s941_s27 }
  0x2d   : > { %s153_s20 = sshll.u32 %s145_s18, 4  ;;  %s154_s20 = int_to_ptr.vmem [resolvable:$true] %s153_s20 }
  0x31   : > { %s150_s12 = scalar_lea.hbm %s1097_s2, %s646_s28  ;;  %s762_s7 = scalar_lea.hbm %s1097_s2, 32 }
  0x32   : > { %s151_s13 = sshll.u32 %s150_s12, 4  ;;  %s152_s13 = int_to_ptr.hbm [resolvable:$true] %s151_s13 }
  0x33   : > { %s755_s23 = sshra.s32 %s152_s13, 4  ;;  %s756_s23 = int_to_ptr.hbm [resolvable:$true] %s755_s23 }
  0x34   : > { %s757_s6 = scalar_lea.hbm %s756_s23, 16  ;;  %p763_p4 = scmp.lt.s32.totalorder %s756_s23, %s1097_s2 }
  0x35   : > { %p758_p9 = scmp.ne.s32.totalorder %s756_s23, %s757_s6  ;;  %p764_p7 = scmp.lt.s32.totalorder %s762_s7, %s757_s6 }
  0x37   : > { %p760_p0 = pnand %p758_p9, %p729_p3  ;;  %p765_p5 = por %p764_p7, %p763_p4 }
  0x39   : > { %p761_p1 = pneg %p760_p0 }
  0x3b   : > { %p766_p8 = pnand %p765_p5, %p761_p1 }
  0x3d   : > { %769 = shalt.err (!%p766_p8)
}
  0x3e   : > { %676 = dma.hbm_to_vmem [thread:$0]  (!%p954_p13), %s152_s13, 256, %s154_s20, %s142_s21, %s857_s30, %s857_s30, %s858_s4  }
  0x3f   : > { %165 = sbr.rel (%p978_p2) target bundleno = 556 (0x22c), region = 28  ;;  %s1004_s27 = sand.u32 (!%p978_p2), 1, %s847_s15  }
  0x40   : > { %s632_s29 = sshll.u32 (!%p978_p2), %s1004_s27, 4  ;;  %s168_s12 = scalar_lea.sflag (!%p978_p2), [#allocation5], %s1004_s27 }
  0x41   : > { %s171_s18 = scalar_lea.vmem (!%p978_p2), [#allocation4], %s632_s29 }
  0x44   : > { %830 = dma.done.wait (%p925_p6), %s168_s12, 256  }
  0x45   : > { %832 = vsyncadd (%p925_p6), %s168_s12, 4294967040  ;;  %s178_s9 = scalar_lea.sflag [#allocation8], %s1004_s27  ;;  %s181_s30 = scalar_lea.vmem [#allocation7], %s632_s29 }
  0x46   : > { %834 = dma.done.wait (%p925_p6), %s178_s9, 256  }
  0x47   : > { %836 = vsyncadd (%p925_p6), %s178_s9, 4294967040  ;;  %vm211_vm0 = vcmask 261120   ;;  %v210_v0 = vld [vmem:[%s171_s18] sm:$0xff]  ;;  %v641_v2 = vld [vmem:[%s181_s30 + $0x8] sm:$0xff]  ;;  %v240_v12 = vlaneseq  ;;  %s209_s24 = sld [smem:[#allocation3]]  ;;  %vm310_vm1 = vcmask 64512   ;;  %s529_s1 = scalar_lea.hbm %s1086_s3, %s903_s0 }
  0x48   : > { %v265_v1 = vld [vmem:[%s181_s30] sm:$0xff]  ;;  %634 = vmatpush.xpose.msk.msra.mxu0 %vm211_vm0, %v210_v0  ;;  %v235_v3 = vmul.f32 %v210_v0, %v210_v0  ;;  %v638_v4 = vld [vmem:[%s171_s18 + $0x8] sm:$0xff]  ;;  %642 = vmatpush.xpose.msk.msra.mxu3 %vm211_vm0, %v641_v2  ;;  %v437_v9 = vmul.f32 %v641_v2, %v641_v2  ;;  %vm317_vm2 = vcmask 7168   ;;  %vm518_vm5 = vcmask 8192   ;;  %s521_s0 = scalar_lea.sflag [#allocation6], %s1004_s27 }
  0x49   : > { %636 = vmatpush.xpose.msk.msra.mxu1 %vm211_vm0, %v265_v1  ;;  %639 = vmatpush.xpose.msk.msra.mxu2 %vm211_vm0, %v638_v4  ;;  %v391_v5 = vmul.f32 %v638_v4, %v638_v4  ;;  %v289_v8 = vmul.f32 %v265_v1, %v265_v1  ;;  %v1029_v15 = vand.u32 127, %v240_v12 }
  0x4a   : > { %v236_v6 = vsel %vm211_vm0, %v235_v3, 0.0  ;;  %v438_v11 = vsel %vm211_vm0, %v437_v9, 0.0 }
  0x4b   : > { %237 = vadd.xlane.f32.xlu0 %v236_v6  ;;  %v392_v7 = vsel %vm211_vm0, %v391_v5, 0.0  ;;  %643 = vmatmul.msk.f32.vlgmr.msra.gmra.mxu3 %vm211_vm0, %v641_v2  ;;  %v290_v10 = vsel %vm211_vm0, %v289_v8, 0.0  ;;  %vm512_vm3 = vcmp.eq.s32.totalorder %v1029_v15, 0  ;;  %vm515_vm4 = vcmp.eq.s32.totalorder %v1029_v15, 1 }
  0x4c   : > { %637 = vmatmul.msk.f32.vlgmr.msra.gmra.mxu1 %vm211_vm0, %v265_v1  ;;  %635 = vmatmul.msk.f32.vlgmr.msra.gmra.mxu0 %vm211_vm0, %v210_v0 }
  0x4d   : > { %393 = vadd.xlane.f32.xlu1 %v392_v7  ;;  %640 = vmatmul.msk.f32.vlgmr.msra.gmra.mxu2 %vm211_vm0, %v638_v4  ;;  %v261_v34 = vstv %s209_s24 }
  0x53   : > { %291 = vadd.xlane.f32.xlu0 %v290_v10 }
  0x55   : > { %439 = vadd.xlane.f32.xlu1 %v438_v11 }
  0xbe   : > { %v238_v13 = vpop.xlane.xlu0 %237 }
  0xbf   : > { %v242_v16 = vperm.slane %v238_v13, %v1029_v15 }
  0xc0   : > { %v394_v14 = vpop.xlane.xlu1 %393 }
  0xc1   : > { %v256_v24 = vadd.f32 %v242_v16, %v238_v13  ;;  %v396_v27 = vperm.slane %v394_v14, %v1029_v15 }
  0xc3   : > { %v404_v33 = vadd.f32 %v396_v27, %v394_v14 }
  0xc6   : > { %v292_v17 = vpop.xlane.xlu0 %291 }
  0xc7   : > { %v294_v18 = vperm.slane %v292_v17, %v1029_v15 }
  0xc8   : > { %v440_v20 = vpop.xlane.xlu1 %439 }
  0xc9   : > { %v286_v19 = vpop.f32.mrf.mxu1  ;;  %v302_v21 = vadd.f32 %v294_v18, %v292_v17  ;;  %v232_v22 = vpop.f32.mrf.mxu0  ;;  %v442_v26 = vperm.slane %v440_v20, %v1029_v15 }
  0xca   : > { %v303_v23 = vmul.f32 2.0, %v286_v19  ;;  %v257_v25 = vmul.f32 2.0, %v232_v22 }
  0xcb   : > { %v450_v32 = vadd.f32 %v442_v26, %v440_v20 }
  0xcc   : > { %v304_v28 = vsub.f32 %v302_v21, %v303_v23  ;;  %v258_v29 = vsub.f32 %v256_v24, %v257_v25 }
  0xce   : > { %v259_v30 = vmax.f32 %v258_v29, 0.0  ;;  %v305_v31 = vmax.f32 %v304_v28, 0.0  ;;  %v434_v35 = vpop.f32.mrf.mxu3 }
  0xcf   : > { %v451_v37 = vmul.f32 2.0, %v434_v35 }
  0xd0   : > { %v260_v36 = vsub.f32 0.0, %v259_v30  ;;  %v388_v38 = vpop.f32.mrf.mxu2  ;;  %v306_v41 = vsub.f32 0.0, %v305_v31 }
  0xd1   : > { %v405_v39 = vmul.f32 2.0, %v388_v38  ;;  %v452_v42 = vsub.f32 %v450_v32, %v451_v37 }
  0xd2   : > { %v262_v40 = vmul.f32 %v261_v34, %v260_v36  ;;  %v307_v47 = vmul.f32 %v306_v41, %v261_v34 }
  0xd3   : > { %v406_v43 = vsub.f32 %v404_v33, %v405_v39  ;;  %v453_v45 = vmax.f32 %v452_v42, 0.0 }
  0xd4   : > { %v263_v44 = vmul.f32 1.442695, %v262_v40  ;;  %v308_v52 = vmul.f32 1.442695, %v307_v47 }
  0xd5   : > { %v407_v46 = vmax.f32 %v406_v43, 0.0  ;;  %v454_v48 = vsub.f32 0.0, %v453_v45 }
  0xd6   : > { %717 = vpow2.f32 %v263_v44 }
  0xd7   : > { %v408_v49 = vsub.f32 0.0, %v407_v46  ;;  %v455_v50 = vmul.f32 %v454_v48, %v261_v34 }
  0xd9   : > { %v409_v51 = vmul.f32 %v408_v49, %v261_v34  ;;  %v456_v53 = vmul.f32 1.442695, %v455_v50 }
  0xdb   : > { %v410_v54 = vmul.f32 1.442695, %v409_v51  ;;  %719 = vpow2.f32 %v456_v53 }
  0xdc   : > { %v718_v55 = vpop.eup %717 }
  0xdd   : > { %721 = vpow2.f32 %v410_v54  ;;  %v311_v56 = vsel %vm310_vm1, %v718_v55, 0.0 }
  0xde   : > { %723 = vpow2.f32 %v308_v52  ;;  %312 = vadd.xlane.f32.xlu2 %v311_v56 }
  0xe1   : > { %v720_v57 = vpop.eup %719 }
  0xe2   : > { %v461_v59 = vsel %vm310_vm1, %v720_v57, 0.0 }
  0xe3   : > { %v722_v58 = vpop.eup %721  ;;  %462 = vadd.xlane.f32.xlu1 %v461_v59 }
  0xe4   : > { %v724_v60 = vpop.eup %723  ;;  %v458_v61 = vsel %vm310_vm1, %v722_v58, 0.0  ;;  %v484_v62 = vmul.f32 %v722_v58, %v720_v57 }
  0xe5   : > { %v314_v63 = vsel %vm310_vm1, %v724_v60, 0.0  ;;  %459 = vadd.xlane.f32.xlu0 %v458_v61  ;;  %v338_v1 = vmul.f32 %v724_v60, %v718_v55 }
  0xe6   : > { %315 = vadd.xlane.f32.xlu2 %v314_v63  ;;  %v485_v0 = vsel %vm310_vm1, %v484_v62, 0.0 }
  0xe7   : > { %v339_v2 = vsel %vm310_vm1, %v338_v1, 0.0 }
  0xeb   : > { %340 = vadd.xlane.f32.xlu1 %v339_v2 }
 0x151   : > { %v313_v3 = vpop.xlane.xlu2 %312 }
 0x152   : > { %v318_v4 = vsel %vm317_vm2, %v313_v3, 0.0 }
 0x153   : > { %319 = vadd.xlane.f32.xlu2 %v318_v4 }
 0x156   : > { %v463_v5 = vpop.xlane.xlu1 %462 }
 0x157   : > { %v474_v6 = vsel %vm317_vm2, %v463_v5, 0.0 }
 0x158   : > { %475 = vadd.xlane.f32.xlu1 %v474_v6  ;;  %v460_v11 = vpop.xlane.xlu0 %459 }
 0x159   : > { %v316_v7 = vpop.xlane.xlu2 %315  ;;  %v464_v12 = vsel %vm317_vm2, %v460_v11, 0.0  ;;  %v495_v13 = vmul.f32 %v463_v5, %v460_v11 }
 0x15a   : > { %v349_v8 = vmul.f32 %v316_v7, %v313_v3  ;;  %v328_v9 = vsel %vm317_vm2, %v316_v7, 0.0 }
 0x15b   : > { %329 = vadd.xlane.f32.xlu0 %v328_v9  ;;  %v496_v14 = vsel %vm317_vm2, %v495_v13, 0.0 }
 0x15c   : > { %v350_v10 = vsel %vm317_vm2, %v349_v8, 0.0 }
 0x15d   : > { %351 = vadd.xlane.f32.xlu2 %v350_v10 }
 0x15e   : > { %v341_v16 = vpop.xlane.xlu1 %340 }
 0x15f   : > { %v342_v17 = vrot.slane %v341_v16, 4 }
 0x161   : > { %v343_v21 = vadd.f32 %v342_v17, %v341_v16 }
 0x163   : > { %465 = vadd.xlane.f32.xlu0 %v464_v12  ;;  %v344_v25 = vrot.slane %v343_v21, 2 }
 0x165   : > { %486 = vadd.xlane.f32.xlu2 %v485_v0  ;;  %v345_v35 = vadd.f32 %v344_v25, %v343_v21 }
 0x167   : > { %v346_v42 = vrot.slane %v345_v35, 1 }
 0x169   : > { %v347_v52 = vadd.f32 %v346_v42, %v345_v35 }
 0x16b   : > { %497 = vadd.xlane.f32.xlu0 %v496_v14 }
 0x1c6   : > { %v320_v18 = vpop.xlane.xlu2 %319 }
 0x1c7   : > { %v321_v19 = vrot.slane %v320_v18, 4 }
 0x1c9   : > { %v322_v20 = vadd.f32 %v321_v19, %v320_v18 }
 0x1cb   : > { %v323_v22 = vrot.slane %v322_v20, 2  ;;  %v476_v23 = vpop.xlane.xlu1 %475 }
 0x1cc   : > { %v477_v27 = vrot.slane %v476_v23, 4 }
 0x1cd   : > { %v324_v24 = vadd.f32 %v323_v22, %v322_v20 }
 0x1ce   : > { %v330_v26 = vpop.xlane.xlu0 %329  ;;  %v478_v34 = vadd.f32 %v477_v27, %v476_v23 }
 0x1cf   : > { %v331_v28 = vrot.slane %v330_v26, 4  ;;  %v325_v29 = vrot.slane %v324_v24, 1 }
 0x1d0   : > { %v352_v30 = vpop.xlane.xlu2 %351  ;;  %v479_v40 = vrot.slane %v478_v34, 2 }
 0x1d1   : > { %v332_v31 = vadd.f32 %v331_v28, %v330_v26  ;;  %v353_v32 = vrot.slane %v352_v30, 4  ;;  %v326_v33 = vadd.f32 %v325_v29, %v324_v24 }
 0x1d2   : > { %v480_v51 = vadd.f32 %v479_v40, %v478_v34 }
 0x1d3   : > { %v333_v36 = vrot.slane %v332_v31, 2  ;;  %v354_v37 = vadd.f32 %v353_v32, %v352_v30  ;;  %648 = vpush %v326_v33 }
 0x1d4   : > { %v481_v59 = vrot.slane %v480_v51, 1 }
 0x1d5   : > { %v355_v38 = vrot.slane %v354_v37, 2  ;;  %v334_v39 = vadd.f32 %v333_v36, %v332_v31 }
 0x1d6   : > { %v466_v41 = vpop.xlane.xlu0 %465  ;;  %v482_v2 = vadd.f32 %v481_v59, %v480_v51 }
 0x1d7   : > { %v467_v43 = vrot.slane %v466_v41, 4  ;;  %v335_v44 = vrot.slane %v334_v39, 1  ;;  %v356_v45 = vadd.f32 %v355_v38, %v354_v37 }
 0x1d8   : > { %v487_v46 = vpop.xlane.xlu2 %486 }
 0x1d9   : > { %v468_v47 = vadd.f32 %v467_v43, %v466_v41  ;;  %v488_v48 = vrot.slane %v487_v46, 4  ;;  %v336_v49 = vadd.f32 %v335_v44, %v334_v39  ;;  %v357_v50 = vrot.slane %v356_v45, 1 }
 0x1db   : > { %v469_v53 = vrot.slane %v468_v47, 2  ;;  %v489_v54 = vadd.f32 %v488_v48, %v487_v46  ;;  %650 = vpush %v336_v49  ;;  %v358_v55 = vadd.f32 %v357_v50, %v356_v45 }
 0x1dc   : > { %652 = vpush %v347_v52 }
 0x1dd   : > { %v490_v56 = vrot.slane %v489_v54, 2  ;;  %654 = vpush %v358_v55  ;;  %v470_v57 = vadd.f32 %v469_v53, %v468_v47 }
 0x1de   : > { %v498_v58 = vpop.xlane.xlu0 %497 }
 0x1df   : > { %v491_v60 = vadd.f32 %v490_v56, %v489_v54  ;;  %v499_v61 = vrot.slane %v498_v58, 4  ;;  %v471_v62 = vrot.slane %v470_v57, 1 }
 0x1e1   : > { %v500_v63 = vadd.f32 %v499_v61, %v498_v58  ;;  %v472_v0 = vadd.f32 %v471_v62, %v470_v57  ;;  %v492_v1 = vrot.slane %v491_v60, 1 }
 0x1e3   : > { %v501_v3 = vrot.slane %v500_v63, 2  ;;  %656 = vpush %v472_v0  ;;  %v493_v4 = vadd.f32 %v492_v1, %v491_v60 }
 0x1e4   : > { %658 = vpush %v482_v2 }
 0x1e5   : > { %v502_v5 = vadd.f32 %v501_v3, %v500_v63  ;;  %660 = vpush %v493_v4 }
 0x1e7   : > { %v503_v6 = vrot.slane %v502_v5, 1 }
 0x1e9   : > { %v504_v7 = vadd.f32 %v503_v6, %v502_v5 }
 0x1eb   : > { %662 = vpush %v504_v7 }
 0x204   : > { %s649_s4 = spop %648 }
 0x205   : > { %s362_s23 = smul.f32 0.015625, %s649_s4  ;;  %s206_s4 = scalar_lea.vmem [#allocation9], %s1004_s27 }
 0x20c   : > { %s651_s5 = spop %650 }
 0x20d   : > { %s653_s13 = spop %652  ;;  %s363_s8 = smul.f32 %s651_s5, %s362_s23 }
 0x20e   : > { %s655_s20 = spop %654  ;;  %s531_s5 = sshll.u32 %s206_s4, 4  ;;  %s532_s5 = int_to_ptr.vmem [resolvable:$true] %s531_s5 }
 0x20f   : > { %s360_s21 = smul.f32 0.25, %s655_s20 }
 0x211   : > { %s361_s6 = ssub.f32 %s653_s13, %s360_s21  ;;  %s533_s13 = sshll.u32 %s529_s1, 4  ;;  %s534_s13 = int_to_ptr.hbm [resolvable:$true] %s533_s13 }
 0x212   : > { %s799_s23 = sshra.s32 %s534_s13, 4  ;;  %s800_s23 = int_to_ptr.hbm [resolvable:$true] %s799_s23 }
 0x213   : > { %s364_s7 = sadd.f32 %s363_s8, %s361_s6  ;;  %s805_s6 = scalar_lea.hbm %s1086_s3, 2 }
 0x214   : > { %s657_s10 = spop %656  ;;  %p806_p10 = scmp.lt.s32.totalorder %s800_s23, %s1086_s3 }
 0x215   : > { %s659_s28 = spop %658  ;;  %s508_s11 = smul.f32 0.015625, %s657_s10 }
 0x216   : > { %s661_s29 = spop %660  ;;  %s365_s9 = smul.f32 0.020408163, %s364_s7 }
 0x217   : > { %s509_s2 = smul.f32 %s659_s28, %s508_s11 }
 0x218   : > { %v513_v8 = vstv %s365_s9 }
 0x219   : > { %v514_v9 = vsel %vm512_vm3, %v513_v8, 0.0 }
 0x21c   : > { %s663_s12 = spop %662 }
 0x21d   : > { %s506_s18 = smul.f32 0.25, %s663_s12 }
 0x21f   : > { %s507_s22 = ssub.f32 %s661_s29, %s506_s18 }
 0x221   : > { %s510_s20 = sadd.f32 %s509_s2, %s507_s22  ;;  %s801_s2 = scalar_lea.hbm %s800_s23, 1 }
 0x222   : > { %p802_p6 = scmp.ne.s32.totalorder %s800_s23, %s801_s2  ;;  %p807_p2 = scmp.lt.s32.totalorder %s805_s6, %s801_s2 }
 0x223   : > { %s511_s21 = smul.f32 0.020408163, %s510_s20 }
 0x224   : > { %p803_p13 = pnand %p802_p6, %p932_p11  ;;  %p808_p9 = por %p807_p2, %p806_p10 }
 0x225   : > { %v516_v10 = vstv %s511_s21 }
 0x226   : > { %v517_v11 = vsel %vm515_vm4, %v516_v10, %v514_v9  ;;  %p804_p3 = pneg %p803_p13 }
 0x227   : > { %519 = vst.msk [vmem:[%s206_s4] sm:$0x1] %vm518_vm5, %v517_v11 }
 0x228   : > { %p809_p0 = pnand %p808_p9, %p804_p3 }
 0x22a   : > { %812 = shalt.err (!%p809_p0)
}
 0x22b   : > { %668 = dma.vmem_to_hbm [thread:$0]  (%p932_p11), %s532_s5, 16, %s534_s13, %s521_s0  }
 0x22c PF: > { %s545_s27 = sand.u32 1, %s843_s14   ;;  %p1098_p1 = scmp.ge.s32.totalorder %s855_s17, 2 }
 0x22d   : > { %s546_s7 = scalar_lea.sflag [#allocation6], %s545_s27 }
 0x22e   : > { %p678_p4 = pnand %p1098_p1, %p936_p12 }
 0x230   : > { %p679_p7 = pneg %p678_p4 }
 0x232   : > { %838 = dma.done.wait (%p679_p7), %s546_s7, 16  }
 0x233   : > { %840 = vsyncadd (%p679_p7), %s546_s7, 4294967280  ;;  %s1099_s28 = sld [smem:[#allocation13_spill]]  ;;  %p20_p5 = scmp.ge.s32.totalorder %s907_s19, 4  }
 0x234   : > { %s1100_s14 = smov %s847_s15  ;;  %s1101_s15 = smov %s851_s16 }
 0x235   : > { %s1103_s17 = smov %s907_s19  ;;  %22 = sbr.rel (!%p20_p5) target bundleno = 11 (0xb), region = 88 }
 0x239   : > { %s1102_s16 = smov %s1099_s28 }
 0x23a   :  { %551 = vsyncpa [#allocation5], 1 }
 0x23b   :  { %553 = vsyncpa [#allocation5 + $0x1], 1 }
 0x23c   :  { %554 = vsyncpa [#allocation8], 1 }
 0x23d   :  { %556 = vsyncpa [#allocation8 + $0x1], 1 }
 0x23e   :  { %557 = vsyncpa [#allocation6], 1 }
 0x23f   :  { %559 = vsyncpa [#allocation6 + $0x1], 1 }

</bundles_post_ra>
